<compile_context>
chip_gen: v5e
topology: v5e:2x2
jax: 0.10.0
libtpu: 0.0.40
codegen_flags: <defaults>
</compile_context>

<pallas_src>
import functools

import numpy as np
import jax
import jax.numpy as jnp
from jax.experimental import pallas as pl
from jax.experimental.pallas import tpu as pltpu


# ----------------------------- Pallas kernel ------------------------------- #
def gcn3_agg_kernel(a_ref, h_ref, x3_ref, cbias_ref, pack_ref, out_ref, acc_ref):
    """Grid = (node-row tiles i [parallel], A_hat-column tiles k [arbitrary]).

    acc[i] = conv_bias + sum_k A_hat[i, k] @ h[k]       (f32 VMEM accumulator)
    finalize: mid = relu(acc); out = [ mid | lin2(mid, BN(x3)) ]  (lane-dense)
    """
    hid = cbias_ref.shape[1]
    f3 = x3_ref.shape[1]
    k = pl.program_id(1)

    @pl.when(k == 0)
    def _init():
        # Seed the accumulator with the GCNConv bias (saves a VPU add and a
        # broadcast in the finalize path).
        acc_ref[...] = jnp.broadcast_to(cbias_ref[...], acc_ref.shape)

    # Message passing == dense normalized-adjacency matmul, accumulated over k.
    # bf16 x bf16 -> f32 on the MXU; no per-step casts or extra matmuls.
    acc_ref[...] += jnp.dot(a_ref[...], h_ref[...],
                            preferred_element_type=jnp.float32)

    @pl.when(k == pl.num_programs(1) - 1)
    def _finalize():
        mid = jnp.maximum(acc_ref[...], 0.0)          # == `middle`
        # Lane-dense packed store: cols [0,hid) = middle (identity columns of
        # the packer), cols [hid,hid+C) = lin2 logits (W2 / BN affine / b2 all
        # folded into pack_ref).  Full 128-lane unmasked store.
        out_ref[...] = (
            jnp.dot(mid, pack_ref[0:hid, :], preferred_element_type=jnp.float32)
            + jnp.dot(x3_ref[...], pack_ref[hid:hid + f3, :],
                      preferred_element_type=jnp.float32)
            + pack_ref[hid + f3:hid + f3 + 1, :])


# --------------------------- tiling / padding ------------------------------ #
def _choose_tiles(n):
    """Pick (tile, n_pad).

    Prefers 512-wide tiles (~85% of HBM roofline; ~3 MiB of double-buffered
    VMEM, well under the v7x 32 MiB scoped limit) and shrinks only for small
    graphs so the parallel i-axis keeps extent >= 2 when possible (both v7x
    TensorCores get work).  N is always padded up to a tile multiple — there
    is no whole-array fallback block.
    """
    tile = 512
    while tile > 128 and n <= tile:
        tile //= 2
    n_pad = ((n + tile - 1) // tile) * tile
    return tile, n_pad


# ------------------------------- forward ----------------------------------- #
def gcn3_forward(a_hat_pad, x, x5, x2, x3, w1t_eff, b1_eff, cbias, pack,
                 *, hidden, num_class):
    """a_hat_pad: [n_pad, n_pad] bf16 zero-padded normalized adjacency (built
    once per static graph).  x/x5/x2/x3: [n, *] f32 raw node features.
    w1t_eff/b1_eff/cbias/pack: folded f32 parameters from prepare_params."""
    n = x.shape[0]
    f3 = x3.shape[1]
    pw = pack.shape[1]
    tile, n_pad = _choose_tiles(n)
    assert a_hat_pad.shape == (n_pad, n_pad), \
        "pad A_hat to the tile multiple returned by _choose_tiles()"
    grid = (n_pad // tile, n_pad // tile)

    # ---- hoisted first_lin: h depends only on the node (k) axis, so compute
    # it ONCE here as a tiny f32 XLA matmul (O(N*48*48)) instead of once per
    # i-tile inside the (i, k) grid.  The x2 prologue and the feature concat
    # are already folded into w1t_eff / b1_eff at trace time.
    h = jnp.concatenate([x, x5, x2], axis=1) @ w1t_eff + b1_eff
    h = h.astype(jnp.bfloat16)
    if n_pad != n:
        h = jnp.pad(h, ((0, n_pad - n), (0, 0)))
        x3 = jnp.pad(x3, ((0, n_pad - n), (0, 0)))

    n_i = grid[0]
    flops = (2 * n_pad * n_pad * hidden                  # A_hat @ h
             + 2 * n_pad * (hidden + f3 + 1) * pw)       # packed lin2 finalize
    bytes_accessed = (n_pad * n_pad * 2                  # A_hat stream (bf16)
                      + n_i * n_pad * hidden * 2         # h re-read per i-tile
                      + n_pad * f3 * 4                   # x3
                      + n_pad * pw * 4                   # packed f32 output
                      + (cbias.size + pack.size) * 4)

    packed = pl.pallas_call(
        gcn3_agg_kernel,
        out_shape=jax.ShapeDtypeStruct((n_pad, pw), jnp.float32),
        grid_spec=pltpu.PrefetchScalarGridSpec(
            num_scalar_prefetch=0,
            grid=grid,
            in_specs=[
                pl.BlockSpec((tile, tile), lambda i, k: (i, k)),    # A_hat
                pl.BlockSpec((tile, hidden), lambda i, k: (k, 0)),  # h (bf16)
                pl.BlockSpec((tile, f3), lambda i, k: (i, 0)),      # x3
                pl.BlockSpec(cbias.shape, lambda i, k: (0, 0)),     # conv bias
                pl.BlockSpec(pack.shape, lambda i, k: (0, 0)),      # packer
            ],
            out_specs=pl.BlockSpec((tile, pw), lambda i, k: (i, 0)),
            scratch_shapes=[pltpu.VMEM((tile, hidden), jnp.float32)]),
        compiler_params=pltpu.CompilerParams(
            dimension_semantics=("parallel", "arbitrary"),
            vmem_limit_bytes=32 * 1024 * 1024),
        cost_estimate=pl.CostEstimate(flops=flops, transcendentals=0,
                                      bytes_accessed=bytes_accessed),
    )(a_hat_pad, h, x3, cbias, pack)

    middle = packed[:n, :hidden]
    logits = packed[:n, hidden:hidden + num_class]
    return logits, middle


# ------------------------------- glue / setup ------------------------------ #
def build_normalized_adjacency(edge_index, num_nodes, norm_weights):
    """Replicates GCNConv2.norm2 + the scatter in `propagate` (eval mode) as a
    dense [N, N] matrix.  Built ONCE for a static graph."""
    row0, col0 = edge_index
    e = row0.shape[0]
    loop = jnp.arange(num_nodes, dtype=row0.dtype)       # add_remaining_self_loops
    row = jnp.concatenate([row0, loop])
    col = jnp.concatenate([col0, loop])
    w = jnp.concatenate([jnp.ones((e,), jnp.float32),
                         jnp.ones((num_nodes,), jnp.float32) * norm_weights])
    deg = jax.ops.segment_sum(w, row, num_segments=num_nodes)
    deg_inv_sqrt = deg ** -0.5
    deg_inv_sqrt = jnp.where(jnp.isinf(deg_inv_sqrt), 0.0, deg_inv_sqrt)
    # note: reference uses deg_inv_sqrt[row] twice (not [col]); replicate that.
    norm = deg_inv_sqrt[row] * w * deg_inv_sqrt[row]
    # aggregation: out[n] = sum_{e: col[e]==n} norm[e] * h[row[e]]
    return jnp.zeros((num_nodes, num_nodes), jnp.float32).at[col, row].add(norm)


def prepare_params(W1, b1, conv_bias, W2, b2,
                   bn_gamma, bn_beta, bn_rmean, bn_rvar, bn_eps,
                   f, f2, f3, f5, hidden, num_class):
    """Trace-time folding of the prologue / BN / lin2 into kernel operands."""
    # ---- fold x2' construction + feature concat into split rows of W1^T ----
    W1T = W1.T                                   # [f+f5+f2, hidden]
    w1_x = W1T[:f, :]
    w1_x5 = W1T[f:f + f5, :]
    w1_x2 = W1T[f + f5:, :]                      # acts on x2'
    w1_x2_head = w1_x2[:f2 - 1, :]
    w1_x2_last = w1_x2[f2 - 1:, :]
    # x2' @ w1_x2 = x2[:, :-1] @ (head - last) + last  (last col of x2 unused)
    w1_x2_eff = jnp.concatenate(
        [w1_x2_head - w1_x2_last, jnp.zeros((1, hidden), jnp.float32)], axis=0)
    w1t_eff = jnp.concatenate([w1_x, w1_x5, w1_x2_eff], axis=0)   # f32
    b1_eff = (b1 + w1_x2_last[0]).astype(jnp.float32)             # [hidden]

    # ---- fold BatchNorm1d (eval) into the x3 half of lin2 ----
    bn_scale = bn_gamma / jnp.sqrt(bn_rvar + bn_eps)
    bn_shift = bn_beta - bn_rmean * bn_scale
    W2a = W2[:, :hidden].T                       # [hidden, C]
    W2b = W2[:, hidden:].T                       # [f3, C]
    W2b_eff = bn_scale[:, None] * W2b
    b2_eff = b2 + bn_shift @ W2b

    # ---- lane-dense output packer: [hidden + f3 + 1, 128] ----
    pw = max(128, ((hidden + num_class + 127) // 128) * 128)
    pack = jnp.zeros((hidden + f3 + 1, pw), jnp.float32)
    pack = pack.at[:hidden, :hidden].set(jnp.eye(hidden, dtype=jnp.float32))
    pack = pack.at[:hidden, hidden:hidden + num_class].set(W2a)
    pack = pack.at[hidden:hidden + f3, hidden:hidden + num_class].set(W2b_eff)
    pack = pack.at[hidden + f3, hidden:hidden + num_class].set(b2_eff)

    cbias = conv_bias[None, :].astype(jnp.float32)
    return w1t_eff, b1_eff, cbias, pack


if __name__ == "__main__":
    # ---- small, deterministic problem sizes ----
    N = 64           # nodes
    E = 128          # edges (no self loops; those are added by norm2)
    F = F2 = F3 = F5 = 16
    HIDDEN = 48
    NUM_CLASS = 2
    FIRST_HIDDEN = F + F5 + F2     # 48 (isconvert=False)

    key = jax.random.PRNGKey(0)
    ks = jax.random.split(key, 9)

    # node features
    x = jax.random.normal(ks[0], (N, F), jnp.float32)
    x2 = jax.random.normal(ks[1], (N, F2), jnp.float32)
    x3 = jax.random.normal(ks[2], (N, F3), jnp.float32)
    x5 = jax.random.normal(ks[3], (N, F5), jnp.float32)

    # random directed edges with row != col
    row = jax.random.randint(ks[4], (E,), 0, N, jnp.int32)
    off = jax.random.randint(ks[5], (E,), 1, N, jnp.int32)
    col = (row + off) % N
    edge_index = jnp.stack([row, col], axis=0)

    # ---- deterministic parameters (shapes from the module __init__) ----
    def linear_init(k, out_f, in_f):
        kw, kb = jax.random.split(k)
        bound = 1.0 / np.sqrt(in_f)
        w = jax.random.uniform(kw, (out_f, in_f), jnp.float32, -bound, bound)
        b = jax.random.uniform(kb, (out_f,), jnp.float32, -bound, bound)
        return w, b

    W1, b1 = linear_init(ks[6], HIDDEN, FIRST_HIDDEN)            # first_lin
    conv_bias = jax.random.uniform(ks[7], (HIDDEN,), jnp.float32,
                                   -1.0 / np.sqrt(HIDDEN), 1.0 / np.sqrt(HIDDEN))
    W2, b2 = linear_init(ks[8], NUM_CLASS, HIDDEN + F3)          # lin2
    norm_weights = jnp.float32(5.0)   # reference picks 1.0 or 5.0 at random
    bn_gamma = jnp.ones((F3,), jnp.float32)
    bn_beta = jnp.zeros((F3,), jnp.float32)
    bn_rmean = jnp.zeros((F3,), jnp.float32)
    bn_rvar = jnp.ones((F3,), jnp.float32)
    bn_eps = 1e-5

    # ---- one-time setup: dense normalized adjacency (padded) + folded params
    a_hat = build_normalized_adjacency(edge_index, N, norm_weights)   # f32 [N,N]
    _, n_pad = _choose_tiles(N)
    a_hat_pad = jnp.pad(a_hat, ((0, n_pad - N), (0, n_pad - N))).astype(jnp.bfloat16)
    w1t_eff, b1_eff, cbias, pack = prepare_params(
        W1, b1, conv_bias, W2, b2, bn_gamma, bn_beta, bn_rmean, bn_rvar, bn_eps,
        F, F2, F3, F5, HIDDEN, NUM_CLASS)

    fwd = jax.jit(functools.partial(gcn3_forward, hidden=HIDDEN,
                                    num_class=NUM_CLASS))
    logits, middle = fwd(a_hat_pad, x, x5, x2, x3,
                         w1t_eff, b1_eff, cbias, pack)
    jax.block_until_ready((logits, middle))

    # ---- pure-JAX f32 reference (original module semantics) ----
    x2_mod = jnp.concatenate(
        [x2[:, :-1], 1.0 - jnp.sum(x2[:, :-1], axis=1, keepdims=True)], axis=1)
    xcat = jnp.concatenate([x, x5, x2_mod], axis=1)
    h_ref = xcat @ W1.T + b1
    mid_ref = jnp.maximum(a_hat @ h_ref + conv_bias, 0.0)
    bn_scale = bn_gamma / jnp.sqrt(bn_rvar + bn_eps)
    bn_shift = bn_beta - bn_rmean * bn_scale
    x3n_ref = x3 * bn_scale + bn_shift
    logits_ref = jnp.concatenate([mid_ref, x3n_ref], axis=1) @ W2.T + b2

    # bf16 A_hat/h on the MXU with f32 accumulation -> loosened tolerance.
    np.testing.assert_allclose(np.asarray(middle), np.asarray(mid_ref),
                               rtol=5e-2, atol=5e-2)
    np.testing.assert_allclose(np.asarray(logits), np.asarray(logits_ref),
                               rtol=5e-2, atol=5e-2)
    print("KERNEL_OK")
</pallas_src>

<mosaic_0001>
module attributes {stable_mosaic.version = 11 : i64} {
  func.func @gcn3_agg_kernel(%arg0: i32, %arg1: i32, %arg2: memref<128x128xbf16, #tpu.memory_space<vmem>>, %arg3: memref<128x48xbf16, #tpu.memory_space<vmem>>, %arg4: memref<128x16xf32, #tpu.memory_space<vmem>>, %arg5: memref<1x48xf32, #tpu.memory_space<vmem>>, %arg6: memref<65x128xf32, #tpu.memory_space<vmem>>, %arg7: memref<128x128xf32, #tpu.memory_space<vmem>>, %arg8: memref<128x48xf32, #tpu.memory_space<vmem>>) attributes {dimension_semantics = [#tpu.dimension_semantics<parallel>, #tpu.dimension_semantics<arbitrary>], iteration_bounds = array<i64: 1, 1>, scalar_prefetch = 0 : i64, scratch_operands = 1 : i64, tpu.core_type = #tpu.core_type<tc>, window_params = [{transform_indices = @transform_0, window_bounds = array<i64: 128, 128>}, {transform_indices = @transform_1, window_bounds = array<i64: 128, 48>}, {transform_indices = @transform_2, window_bounds = array<i64: 128, 16>}, {pipeline_mode = #tpu.pipeline_mode<synchronous>, transform_indices = @transform_3, window_bounds = array<i64: 1, 48>}, {pipeline_mode = #tpu.pipeline_mode<synchronous>, transform_indices = @transform_4, window_bounds = array<i64: 65, 128>}, {transform_indices = @transform_5, window_bounds = array<i64: 128, 128>}]} {
    %c0_i32 = arith.constant 0 : i32
    %0 = arith.cmpi eq, %arg1, %c0_i32 : i32
    %1 = arith.extui %0 : i1 to i32
    %c0_i32_0 = arith.constant 0 : i32
    %2 = arith.cmpi ne, %1, %c0_i32_0 : i32
    scf.if %2 {
      %c0_10 = arith.constant 0 : index
      %c0_11 = arith.constant 0 : index
      %12 = vector.load %arg5[%c0_10, %c0_11] : memref<1x48xf32, #tpu.memory_space<vmem>>, vector<1x48xf32>
      %13 = vector.shape_cast %12 : vector<1x48xf32> to vector<1x48xf32>
      %14 = vector.broadcast %13 : vector<1x48xf32> to vector<128x48xf32>
      %c0_12 = arith.constant 0 : index
      %c0_13 = arith.constant 0 : index
      %15 = vector.load %arg8[%c0_12, %c0_13] : memref<128x48xf32, #tpu.memory_space<vmem>>, vector<128x48xf32>
      tpu.vector_store %arg8[%c0_12, %c0_13], %14 {strides = array<i32>} : memref<128x48xf32, #tpu.memory_space<vmem>>, vector<128x48xf32>,
    } else {
    }
    %c0 = arith.constant 0 : index
    %c0_1 = arith.constant 0 : index
    %3 = vector.load %arg8[%c0, %c0_1] : memref<128x48xf32, #tpu.memory_space<vmem>>, vector<128x48xf32>
    %c0_2 = arith.constant 0 : index
    %c0_3 = arith.constant 0 : index
    %4 = vector.load %arg2[%c0_2, %c0_3] : memref<128x128xbf16, #tpu.memory_space<vmem>>, vector<128x128xbf16>
    %c0_4 = arith.constant 0 : index
    %c0_5 = arith.constant 0 : index
    %5 = vector.load %arg3[%c0_4, %c0_5] : memref<128x48xbf16, #tpu.memory_space<vmem>>, vector<128x48xbf16>
    %cst = arith.constant dense<0.000000e+00> : vector<128x48xf32>
    %6 = tpu.matmul %4, %5, %cst {dimension_numbers = #tpu.dot_dimension_numbers<[1], [0], [0], [1], [0, 0, 1, 1], [], []>} : vector<128x128xbf16>, vector<128x48xbf16>, vector<128x48xf32> -> vector<128x48xf32>
    %7 = arith.addf %3, %6 : vector<128x48xf32>
    %c0_6 = arith.constant 0 : index
    %c0_7 = arith.constant 0 : index
    %8 = vector.load %arg8[%c0_6, %c0_7] : memref<128x48xf32, #tpu.memory_space<vmem>>, vector<128x48xf32>
    tpu.vector_store %arg8[%c0_6, %c0_7], %7 {strides = array<i32>} : memref<128x48xf32, #tpu.memory_space<vmem>>, vector<128x48xf32>,
    %c0_i32_8 = arith.constant 0 : i32
    %9 = arith.cmpi eq, %arg1, %c0_i32_8 : i32
    %10 = arith.extui %9 : i1 to i32
    %c0_i32_9 = arith.constant 0 : i32
    %11 = arith.cmpi ne, %10, %c0_i32_9 : i32
    scf.if %11 {
      %c0_10 = arith.constant 0 : index
      %c0_11 = arith.constant 0 : index
      %12 = vector.load %arg8[%c0_10, %c0_11] : memref<128x48xf32, #tpu.memory_space<vmem>>, vector<128x48xf32>
      %cst_12 = arith.constant 0.000000e+00 : f32
      %13 = vector.broadcast %cst_12 : f32 to vector<128x48xf32>
      %14 = arith.maximumf %12, %13 : vector<128x48xf32>
      %c0_13 = arith.constant 0 : index
      %c0_14 = arith.constant 0 : index
      %15 = vector.load %arg6[%c0_13, %c0_14] : memref<65x128xf32, #tpu.memory_space<vmem>>, vector<48x128xf32>
      %cst_15 = arith.constant dense<0.000000e+00> : vector<128x128xf32>
      %16 = tpu.matmul %14, %15, %cst_15 {dimension_numbers = #tpu.dot_dimension_numbers<[1], [0], [0], [1], [0, 0, 1, 1], [], []>} : vector<128x48xf32>, vector<48x128xf32>, vector<128x128xf32> -> vector<128x128xf32>
      %c0_16 = arith.constant 0 : index
      %c0_17 = arith.constant 0 : index
      %17 = vector.load %arg4[%c0_16, %c0_17] : memref<128x16xf32, #tpu.memory_space<vmem>>, vector<128x16xf32>
      %c48 = arith.constant 48 : index
      %c0_18 = arith.constant 0 : index
      %18 = vector.load %arg6[%c48, %c0_18] : memref<65x128xf32, #tpu.memory_space<vmem>>, vector<16x128xf32>
      %cst_19 = arith.constant dense<0.000000e+00> : vector<128x128xf32>
      %19 = tpu.matmul %17, %18, %cst_19 {dimension_numbers = #tpu.dot_dimension_numbers<[1], [0], [0], [1], [0, 0, 1, 1], [], []>} : vector<128x16xf32>, vector<16x128xf32>, vector<128x128xf32> -> vector<128x128xf32>
      %20 = arith.addf %16, %19 : vector<128x128xf32>
      %c64 = arith.constant 64 : index
      %c0_20 = arith.constant 0 : index
      %21 = vector.load %arg6[%c64, %c0_20] : memref<65x128xf32, #tpu.memory_space<vmem>>, vector<1x128xf32>
      %22 = vector.broadcast %21 : vector<1x128xf32> to vector<128x128xf32>
      %23 = arith.addf %20, %22 : vector<128x128xf32>
      %c0_21 = arith.constant 0 : index
      %c0_22 = arith.constant 0 : index
      %24 = vector.load %arg7[%c0_21, %c0_22] : memref<128x128xf32, #tpu.memory_space<vmem>>, vector<128x128xf32>
      tpu.vector_store %arg7[%c0_21, %c0_22], %23 {strides = array<i32>} : memref<128x128xf32, #tpu.memory_space<vmem>>, vector<128x128xf32>,
    } else {
    }
    return
  }
  func.func @transform_0(%arg0: i32, %arg1: i32) -> (i32, i32) {
    %c0_i32 = arith.constant 0 : i32
    return %arg0, %arg1 : i32, i32
  }
  func.func @transform_1(%arg0: i32, %arg1: i32) -> (i32, i32) {
    %c0_i32 = arith.constant 0 : i32
    %c0_i32_0 = arith.constant 0 : i32
    return %arg1, %c0_i32 : i32, i32
  }
  func.func @transform_2(%arg0: i32, %arg1: i32) -> (i32, i32) {
    %c0_i32 = arith.constant 0 : i32
    %c0_i32_0 = arith.constant 0 : i32
    return %arg0, %c0_i32 : i32, i32
  }
  func.func @transform_3(%arg0: i32, %arg1: i32) -> (i32, i32) {
    %c0_i32 = arith.constant 0 : i32
    %c0_i32_0 = arith.constant 0 : i32
    %c0_i32_1 = arith.constant 0 : i32
    return %c0_i32, %c0_i32_0 : i32, i32
  }
  func.func @transform_4(%arg0: i32, %arg1: i32) -> (i32, i32) {
    %c0_i32 = arith.constant 0 : i32
    %c0_i32_0 = arith.constant 0 : i32
    %c0_i32_1 = arith.constant 0 : i32
    return %c0_i32, %c0_i32_0 : i32, i32
  }
  func.func @transform_5(%arg0: i32, %arg1: i32) -> (i32, i32) {
    %c0_i32 = arith.constant 0 : i32
    %c0_i32_0 = arith.constant 0 : i32
    return %arg0, %c0_i32 : i32, i32
  }
}

</mosaic_0001>

<bundles_post_ra>
// kernel: gcn3_forward.1
= control target key start
LH: loop header
LB: loop body
LE: loop exit
PB: predicated region body
PF: predicated region fallthrough
CT: control target
= control target key end

     0   :  { %vm28_vm0 = vcmask 392192   ;;  %vm330_vm1 = vcmask 130048   ;;  %s1011_s1 = inlined_call_operand.vmem [shape: bf16[128,48], index: 1, kind: input, shape index: {}]   ;;  %s1012_s4 = inlined_call_operand.vmem [shape: f32[65,128], index: 4, kind: input, shape index: {}]   ;;  %s1013_s3 = inlined_call_operand.vmem [shape: f32[1,48], index: 3, kind: input, shape index: {}]   ;;  %s1014_s0 = inlined_call_operand.vmem [shape: bf16[128,128], index: 0, kind: input, shape index: {}]   ;;  %s1015_s2 = inlined_call_operand.vmem [shape: f32[128,16], index: 2, kind: input, shape index: {}]   ;;  %s1016_s5 = inlined_call_operand.vmem [shape: f32[128,128], index: 5, kind: output, shape index: {}]  }
   0x1   :  { %v706_v0 = vld [vmem:[%s1011_s1 + $0x38] sm:$0xff]  ;;  %v705_v1 = vld [vmem:[%s1011_s1 + $0x30] sm:$0xff]  ;;  %v704_v2 = vld [vmem:[%s1011_s1 + $0x28] sm:$0xff] }
   0x2   :  { %189 = vmatpush.bf16.msra.mxu0 %v706_v0  ;;  %707 = vmatpush.bf16.msra.mxu3 %v706_v0  ;;  %v703_v3 = vld [vmem:[%s1011_s1 + $0x20] sm:$0xff]  ;;  %v702_v4 = vld [vmem:[%s1011_s1 + $0x18] sm:$0xff]  ;;  %v701_v5 = vld [vmem:[%s1011_s1 + $0x10] sm:$0xff] }
   0x3   :  { %v700_v6 = vld [vmem:[%s1011_s1 + $0x8] sm:$0xff]  ;;  %v699_v7 = vld [vmem:[%s1011_s1] sm:$0xff]  ;;  %v697_v9 = vld [vmem:[%s1014_s0 + $0x30] sm:$0xff] }
   0x4   :  { %v691_v8 = vld [vmem:[%s1014_s0] sm:$0xff]  ;;  %v692_v10 = vld [vmem:[%s1014_s0 + $0x8] sm:$0xff]  ;;  %v698_v11 = vld [vmem:[%s1014_s0 + $0x38] sm:$0xff] }
   0x5   :  { %v693_v12 = vld [vmem:[%s1014_s0 + $0x10] sm:$0xff]  ;;  %v694_v13 = vld [vmem:[%s1014_s0 + $0x18] sm:$0xff]  ;;  %v312_v16 = vld [vmem:[%s1015_s2] sm:$0xff] }
   0x6   :  { %190 = vmatpush.bf16.msra.mxu0 %v705_v1  ;;  %708 = vmatpush.bf16.msra.mxu3 %v705_v1  ;;  %v329_v14 = vld [vmem:[%s1012_s4 + $0x38] sm:$0xff]  ;;  %v328_v15 = vld [vmem:[%s1012_s4 + $0x30] sm:$0xff]  ;;  %v724_v17 = vld [vmem:[%s1013_s3] ss:$0 sm:$0xff] }
   0x7   :  { %393 = vmatpush.msra.mxu1 %v329_v14  ;;  %29 = vst.msk [vmem:[#allocation2] sm:$0xff] %vm28_vm0, %v724_v17  ;;  %v313_v18 = vld [vmem:[%s1015_s2 + $0x8] sm:$0xff]  ;;  %v695_v19 = vld [vmem:[%s1014_s0 + $0x20] sm:$0xff]  ;;  %v314_v22 = vld [vmem:[%s1015_s2 + $0x10] sm:$0xff] }
   0x8   :  { %30 = vst.msk [vmem:[#allocation2 + $0x8] sm:$0xff] %vm28_vm0, %v724_v17  ;;  %v696_v20 = vld [vmem:[%s1014_s0 + $0x28] sm:$0xff]  ;;  %v310_v23 = vld [vmem:[%s1012_s4 + $0x20] sm:$0xff]  ;;  %v309_v24 = vld [vmem:[%s1012_s4 + $0x18] sm:$0xff] }
   0x9   :  { %394 = vmatpush.msra.mxu1 %v328_v15  ;;  %31 = vst.msk [vmem:[#allocation2 + $0x10] sm:$0xff] %vm28_vm0, %v724_v17  ;;  %v311_v21 = vld [vmem:[%s1012_s4 + $0x28] sm:$0xff]  ;;  %v308_v25 = vld [vmem:[%s1012_s4 + $0x10] sm:$0xff]  ;;  %v315_v27 = vld [vmem:[%s1015_s2 + $0x18] sm:$0xff] }
   0xa   :  { %191 = vmatpush.bf16.msra.mxu0 %v704_v2  ;;  %709 = vmatpush.bf16.msra.mxu3 %v704_v2  ;;  %32 = vst.msk [vmem:[#allocation2 + $0x18] sm:$0xff] %vm28_vm0, %v724_v17  ;;  %v307_v26 = vld [vmem:[%s1012_s4 + $0x8] sm:$0xff]  ;;  %v306_v28 = vld [vmem:[%s1012_s4] sm:$0xff]  ;;  %v318_v34 = vld [vmem:[%s1015_s2 + $0x30] sm:$0xff] }
   0xb   :  { %659 = vmatmul.msk.f32.vlgmr.msra.gmra.mxu1 %vm330_vm1, %v312_v16  ;;  %33 = vst.msk [vmem:[#allocation2 + $0x20] sm:$0xff] %vm28_vm0, %v724_v17  ;;  %502 = vmatpush.msra.mxu2 %v311_v21  ;;  %v316_v29 = vld [vmem:[%s1015_s2 + $0x20] sm:$0xff]  ;;  %v317_v30 = vld [vmem:[%s1015_s2 + $0x28] sm:$0xff]  ;;  %v319_v39 = vld [vmem:[%s1015_s2 + $0x38] sm:$0xff] }
   0xc   :  { %34 = vst.msk [vmem:[#allocation2 + $0x28] sm:$0xff] %vm28_vm0, %v724_v17  ;;  %v320_v46 = vld [vmem:[%s1015_s2 + $0x40] sm:$0xff]  ;;  %v326_v49 = vld [vmem:[%s1015_s2 + $0x70] sm:$0xff]  ;;  %v321_v58 = vld [vmem:[%s1015_s2 + $0x48] sm:$0xff] }
   0xd   :  { %35 = vst.msk [vmem:[#allocation2 + $0x30] sm:$0xff] %vm28_vm0, %v724_v17  ;;  %503 = vmatpush.msra.mxu2 %v310_v23  ;;  %v327_v60 = vld [vmem:[%s1015_s2 + $0x78] sm:$0xff] }
   0xe   :  { %192 = vmatpush.bf16.msra.mxu0 %v703_v3  ;;  %710 = vmatpush.bf16.msra.mxu3 %v703_v3  ;;  %36 = vst.msk [vmem:[#allocation2 + $0x38] sm:$0xff] %vm28_vm0, %v724_v17  ;;  %v45_v31 = vld [vmem:[#allocation2] sm:$0xff] }
   0xf   :  { %37 = vst.msk [vmem:[#allocation2 + $0x40] sm:$0xff] %vm28_vm0, %v724_v17  ;;  %504 = vmatpush.msra.mxu2 %v309_v24  ;;  %v46_v35 = vld [vmem:[#allocation2 + $0x8] sm:$0xff] }
  0x10   :  { %38 = vst.msk [vmem:[#allocation2 + $0x48] sm:$0xff] %vm28_vm0, %v724_v17  ;;  %v47_v41 = vld [vmem:[#allocation2 + $0x10] sm:$0xff] }
  0x11   :  { %39 = vst.msk [vmem:[#allocation2 + $0x50] sm:$0xff] %vm28_vm0, %v724_v17  ;;  %505 = vmatpush.msra.mxu2 %v308_v25  ;;  %v48_v51 = vld [vmem:[#allocation2 + $0x18] sm:$0xff] }
  0x12   :  { %193 = vmatpush.bf16.msra.mxu0 %v702_v4  ;;  %711 = vmatpush.bf16.msra.mxu3 %v702_v4  ;;  %40 = vst.msk [vmem:[#allocation2 + $0x58] sm:$0xff] %vm28_vm0, %v724_v17  ;;  %v49_v61 = vld [vmem:[#allocation2 + $0x20] sm:$0xff]  ;;  %v322_v4 = vld [vmem:[%s1015_s2 + $0x50] sm:$0xff] }
  0x13   :  { %660 = vmatmul.msk.f32.gmra.mxu1 %vm330_vm1, %v313_v18  ;;  %41 = vst.msk [vmem:[#allocation2 + $0x60] sm:$0xff] %vm28_vm0, %v724_v17  ;;  %506 = vmatpush.msra.mxu2 %v307_v26 }
  0x14   :  { %42 = vst.msk [vmem:[#allocation2 + $0x68] sm:$0xff] %vm28_vm0, %v724_v17 }
  0x15   :  { %43 = vst.msk [vmem:[#allocation2 + $0x70] sm:$0xff] %vm28_vm0, %v724_v17  ;;  %507 = vmatpush.msra.mxu2 %v306_v28 }
  0x16   :  { %194 = vmatpush.bf16.msra.mxu0 %v701_v5  ;;  %712 = vmatpush.bf16.msra.mxu3 %v701_v5  ;;  %44 = vst.msk [vmem:[#allocation2 + $0x78] sm:$0xff] %vm28_vm0, %v724_v17 }
  0x1a   :  { %195 = vmatpush.bf16.msra.mxu0 %v700_v6  ;;  %713 = vmatpush.bf16.msra.mxu3 %v700_v6  ;;  %v57_v48 = vld [vmem:[#allocation2 + $0x60] sm:$0xff] }
  0x1b   :  { %661 = vmatmul.msk.f32.gmra.mxu1 %vm330_vm1, %v314_v22  ;;  %v58_v53 = vld [vmem:[#allocation2 + $0x68] sm:$0xff] }
  0x1c   :  { %v59_v63 = vld [vmem:[#allocation2 + $0x70] sm:$0xff] }
  0x1e   :  { %196 = vmatpush.bf16.msra.mxu0 %v699_v7  ;;  %714 = vmatpush.bf16.msra.mxu3 %v699_v7 }
  0x21   :  { %197 = vmatmul.bf16.vlgmr.msra.gmra.mxu0 %v691_v8  ;;  %227 = vmatmul.bf16.vlgmr.msra.gmra.mxu3 %v697_v9  ;;  %v50_v8 = vld [vmem:[#allocation2 + $0x28] sm:$0xff] }
  0x22   :  { %715 = vmatpush.msrb.mxu3 %v329_v14 }
  0x23   :  { %662 = vmatmul.msk.f32.gmra.mxu1 %vm330_vm1, %v315_v27  ;;  %v52_v27 = vld [vmem:[#allocation2 + $0x38] sm:$0xff] }
  0x24   :  { %716 = vmatpush.msrb.mxu3 %v328_v15  ;;  %v323_v15 = vld [vmem:[%s1015_s2 + $0x58] sm:$0xff] }
  0x26   :  { %717 = vmatpush.msra.mxu3 %v311_v21 }
  0x28   :  { %718 = vmatpush.msra.mxu3 %v310_v23  ;;  %v324_v23 = vld [vmem:[%s1015_s2 + $0x60] sm:$0xff] }
  0x2a   :  { %719 = vmatpush.msra.mxu3 %v309_v24 }
  0x2b   :  { %663 = vmatmul.msk.f32.gmra.mxu1 %vm330_vm1, %v316_v29 }
  0x2c   :  { %720 = vmatpush.msra.mxu3 %v308_v25 }
  0x2e   :  { %721 = vmatpush.msra.mxu3 %v307_v26 }
  0x30   :  { %722 = vmatpush.msra.mxu3 %v306_v28 }
  0x31   :  { %202 = vmatmul.bf16.gmra.mxu0 %v692_v10  ;;  %232 = vmatmul.bf16.gmra.mxu3 %v698_v11  ;;  %v60_v10 = vld [vmem:[#allocation2 + $0x78] sm:$0xff] }
  0x33   :  { %664 = vmatmul.msk.f32.gmra.mxu1 %vm330_vm1, %v317_v30 }
  0x3b   :  { %665 = vmatmul.msk.f32.gmra.mxu1 %vm330_vm1, %v318_v34 }
  0x41   :  { %207 = vmatmul.bf16.gmra.mxu0 %v693_v12  ;;  %673 = vmatmul.msk.f32.vlgmr.msrb.gmra.mxu3 %vm330_vm1, %v326_v49  ;;  %v56_v49 = vld [vmem:[#allocation2 + $0x58] sm:$0xff] }
  0x43   :  { %666 = vmatmul.msk.f32.gmra.mxu1 %vm330_vm1, %v319_v39 }
  0x49   :  { %674 = vmatmul.msk.f32.gmra.mxu3 %vm330_vm1, %v327_v60 }
  0x4b   :  { %667 = vmatmul.msk.f32.gmra.mxu1 %vm330_vm1, %v320_v46 }
  0x51   :  { %212 = vmatmul.bf16.gmra.mxu0 %v694_v13 }
  0x53   :  { %668 = vmatmul.msk.f32.gmra.mxu1 %vm330_vm1, %v321_v58 }
  0x5b   :  { %669 = vmatmul.msk.f32.gmra.mxu1 %vm330_vm1, %v322_v4 }
  0x61   :  { %217 = vmatmul.bf16.gmra.mxu0 %v695_v19  ;;  %v51_v19 = vld [vmem:[#allocation2 + $0x30] sm:$0xff] }
  0x63   :  { %670 = vmatmul.msk.f32.gmra.mxu1 %vm330_vm1, %v323_v15 }
  0x6b   :  { %671 = vmatmul.msk.f32.gmra.mxu1 %vm330_vm1, %v324_v23 }
  0x71   :  { %222 = vmatmul.bf16.gmra.mxu0 %v696_v20 }
  0x9e   :  { %v198_v32 = vpop.f32.mrf.mxu0 }
  0x9f   :  { %v238_v33 = vadd.f32 %v198_v32, %v45_v31  ;;  %v325_v31 = vld [vmem:[%s1015_s2 + $0x68] sm:$0xff] }
  0xa0   :  { %672 = vmatmul.msk.f32.gmra.mxu1 %vm330_vm1, %v325_v31 }
  0xa1   :  { %255 = vst.msk [vmem:[#allocation2] sm:$0xff] %vm28_vm0, %v238_v33  ;;  %v53_v33 = vld [vmem:[#allocation2 + $0x40] sm:$0xff] }
  0xa4   :  { %v228_v43 = vpop.f32.mrf.mxu3 }
  0xa5   :  { %v250_v50 = vadd.f32 %v228_v43, %v57_v48  ;;  %v396_v43 = vpop.f32.mrf.mxu1 }
  0xa6   :  { %v200_v36 = vpop.f32.mrf.mxu0 }
  0xa7   :  { %v239_v37 = vadd.f32 %v200_v36, %v46_v35  ;;  %267 = vst.msk [vmem:[#allocation2 + $0x60] sm:$0xff] %vm28_vm0, %v250_v50 }
  0xa8   :  { %v274_v38 = vld [vmem:[#allocation2] sm:$0xff] }
  0xa9   :  { %256 = vst.msk [vmem:[#allocation2 + $0x8] sm:$0xff] %vm28_vm0, %v239_v37  ;;  %v290_v40 = vmax.f32 %v274_v38, 0.0  ;;  %v54_v38 = vld [vmem:[#allocation2 + $0x48] sm:$0xff] }
  0xab   :  { %675 = vmatmul.msk.f32.vlgmr.msra.gmra.mxu2 %vm28_vm0, %v290_v40 }
  0xac   :  { %v230_v54 = vpop.f32.mrf.mxu3 }
  0xad   :  { %v251_v56 = vadd.f32 %v230_v54, %v58_v53  ;;  %v399_v50 = vpop.f32.mrf.mxu1 }
  0xae   :  { %v203_v42 = vpop.f32.mrf.mxu0  ;;  %v286_v58 = vld [vmem:[#allocation2 + $0x60] sm:$0xff] }
  0xaf   :  { %v240_v44 = vadd.f32 %v203_v42, %v47_v41  ;;  %268 = vst.msk [vmem:[#allocation2 + $0x68] sm:$0xff] %vm28_vm0, %v251_v56  ;;  %v302_v60 = vmax.f32 %v286_v58, 0.0 }
  0xb0   :  { %v275_v45 = vld [vmem:[#allocation2 + $0x8] sm:$0xff] }
  0xb1   :  { %257 = vst.msk [vmem:[#allocation2 + $0x10] sm:$0xff] %vm28_vm0, %v240_v44  ;;  %v291_v47 = vmax.f32 %v275_v45, 0.0  ;;  %v55_v44 = vld [vmem:[#allocation2 + $0x50] sm:$0xff] }
  0xb3   :  { %676 = vmatmul.msk.f32.gmra.mxu2 %vm28_vm0, %v291_v47 }
  0xb4   :  { %v233_v0 = vpop.f32.mrf.mxu3 }
  0xb5   :  { %v252_v2 = vadd.f32 %v233_v0, %v59_v63 }
  0xb6   :  { %v205_v52 = vpop.f32.mrf.mxu0  ;;  %v287_v6 = vld [vmem:[#allocation2 + $0x68] sm:$0xff] }
  0xb7   :  { %v241_v55 = vadd.f32 %v205_v52, %v48_v51  ;;  %269 = vst.msk [vmem:[#allocation2 + $0x70] sm:$0xff] %vm28_vm0, %v252_v2  ;;  %v303_v7 = vmax.f32 %v287_v6, 0.0 }
  0xb8   :  { %v276_v57 = vld [vmem:[#allocation2 + $0x10] sm:$0xff] }
  0xb9   :  { %258 = vst.msk [vmem:[#allocation2 + $0x18] sm:$0xff] %vm28_vm0, %v241_v55  ;;  %v292_v59 = vmax.f32 %v276_v57, 0.0  ;;  %688 = vmatmul.msk.f32.vlgmr.msra.gmra.mxu3 %vm28_vm0, %v303_v7  ;;  %v402_v55 = vpop.f32.mrf.mxu1 }
  0xbb   :  { %677 = vmatmul.msk.f32.gmra.mxu2 %vm28_vm0, %v292_v59 }
  0xbc   :  { %v235_v11 = vpop.f32.mrf.mxu3 }
  0xbd   :  { %v253_v13 = vadd.f32 %v235_v11, %v60_v10 }
  0xbe   :  { %v208_v62 = vpop.f32.mrf.mxu0  ;;  %v288_v17 = vld [vmem:[#allocation2 + $0x70] sm:$0xff] }
  0xbf   :  { %v242_v1 = vadd.f32 %v208_v62, %v49_v61  ;;  %270 = vst.msk [vmem:[#allocation2 + $0x78] sm:$0xff] %vm28_vm0, %v253_v13  ;;  %v304_v18 = vmax.f32 %v288_v17, 0.0 }
  0xc0   :  { %v277_v3 = vld [vmem:[#allocation2 + $0x18] sm:$0xff] }
  0xc1   :  { %259 = vst.msk [vmem:[#allocation2 + $0x20] sm:$0xff] %vm28_vm0, %v242_v1  ;;  %v293_v5 = vmax.f32 %v277_v3, 0.0  ;;  %689 = vmatmul.msk.f32.gmra.mxu3 %vm28_vm0, %v304_v18  ;;  %v405_v59 = vpop.f32.mrf.mxu1  ;;  %v945_v1 = vld [vmem:[%s1012_s4 + $0x40] ss:$0 sm:$0xff] }
  0xc3   :  { %678 = vmatmul.msk.f32.gmra.mxu2 %vm28_vm0, %v293_v5 }
  0xc4   :  { %v438_v6 = vpop.f32.mrf.mxu3 }
  0xc6   :  { %v210_v9 = vpop.f32.mrf.mxu0  ;;  %v289_v25 = vld [vmem:[#allocation2 + $0x78] sm:$0xff] }
  0xc7   :  { %v243_v12 = vadd.f32 %v210_v9, %v50_v8  ;;  %v305_v26 = vmax.f32 %v289_v25, 0.0 }
  0xc8   :  { %v278_v14 = vld [vmem:[#allocation2 + $0x20] sm:$0xff] }
  0xc9   :  { %260 = vst.msk [vmem:[#allocation2 + $0x28] sm:$0xff] %vm28_vm0, %v243_v12  ;;  %v294_v16 = vmax.f32 %v278_v14, 0.0  ;;  %690 = vmatmul.msk.f32.gmra.mxu3 %vm28_vm0, %v305_v26  ;;  %v408_v61 = vpop.f32.mrf.mxu1 }
  0xcb   :  { %679 = vmatmul.msk.f32.gmra.mxu2 %vm28_vm0, %v294_v16 }
  0xcc   :  { %v441_v11 = vpop.f32.mrf.mxu3 }
  0xce   :  { %v213_v20 = vpop.f32.mrf.mxu0 }
  0xcf   :  { %v244_v21 = vadd.f32 %v213_v20, %v51_v19 }
  0xd0   :  { %v279_v22 = vld [vmem:[#allocation2 + $0x28] sm:$0xff] }
  0xd1   :  { %261 = vst.msk [vmem:[#allocation2 + $0x30] sm:$0xff] %vm28_vm0, %v244_v21  ;;  %v295_v24 = vmax.f32 %v279_v22, 0.0  ;;  %v411_v62 = vpop.f32.mrf.mxu1 }
  0xd3   :  { %680 = vmatmul.msk.f32.gmra.mxu2 %vm28_vm0, %v295_v24 }
  0xd6   :  { %v215_v28 = vpop.f32.mrf.mxu0 }
  0xd7   :  { %v245_v29 = vadd.f32 %v215_v28, %v52_v27 }
  0xd8   :  { %v280_v30 = vld [vmem:[#allocation2 + $0x30] sm:$0xff] }
  0xd9   :  { %262 = vst.msk [vmem:[#allocation2 + $0x38] sm:$0xff] %vm28_vm0, %v245_v29  ;;  %v296_v32 = vmax.f32 %v280_v30, 0.0  ;;  %v414_v63 = vpop.f32.mrf.mxu1 }
  0xdb   :  { %681 = vmatmul.msk.f32.gmra.mxu2 %vm28_vm0, %v296_v32 }
  0xde   :  { %v218_v34 = vpop.f32.mrf.mxu0 }
  0xdf   :  { %v246_v35 = vadd.f32 %v218_v34, %v53_v33 }
  0xe0   :  { %v281_v36 = vld [vmem:[#allocation2 + $0x38] sm:$0xff] }
  0xe1   :  { %263 = vst.msk [vmem:[#allocation2 + $0x40] sm:$0xff] %vm28_vm0, %v246_v35  ;;  %v297_v37 = vmax.f32 %v281_v36, 0.0  ;;  %v417_v0 = vpop.f32.mrf.mxu1 }
  0xe3   :  { %682 = vmatmul.msk.f32.gmra.mxu2 %vm28_vm0, %v297_v37 }
  0xe6   :  { %v220_v39 = vpop.f32.mrf.mxu0 }
  0xe7   :  { %v247_v40 = vadd.f32 %v220_v39, %v54_v38 }
  0xe8   :  { %v282_v41 = vld [vmem:[#allocation2 + $0x40] sm:$0xff] }
  0xe9   :  { %264 = vst.msk [vmem:[#allocation2 + $0x48] sm:$0xff] %vm28_vm0, %v247_v40  ;;  %v298_v42 = vmax.f32 %v282_v41, 0.0  ;;  %v420_v3 = vpop.f32.mrf.mxu1 }
  0xeb   :  { %683 = vmatmul.msk.f32.gmra.mxu2 %vm28_vm0, %v298_v42 }
  0xee   :  { %v223_v45 = vpop.f32.mrf.mxu0 }
  0xef   :  { %v248_v46 = vadd.f32 %v223_v45, %v55_v44 }
  0xf0   :  { %v283_v47 = vld [vmem:[#allocation2 + $0x48] sm:$0xff] }
  0xf1   :  { %265 = vst.msk [vmem:[#allocation2 + $0x50] sm:$0xff] %vm28_vm0, %v248_v46  ;;  %v299_v48 = vmax.f32 %v283_v47, 0.0  ;;  %v423_v8 = vpop.f32.mrf.mxu1 }
  0xf3   :  { %684 = vmatmul.msk.f32.gmra.mxu2 %vm28_vm0, %v299_v48 }
  0xf6   :  { %v225_v51 = vpop.f32.mrf.mxu0 }
  0xf7   :  { %v249_v52 = vadd.f32 %v225_v51, %v56_v49 }
  0xf8   :  { %v284_v53 = vld [vmem:[#allocation2 + $0x50] sm:$0xff] }
  0xf9   :  { %266 = vst.msk [vmem:[#allocation2 + $0x58] sm:$0xff] %vm28_vm0, %v249_v52  ;;  %v300_v54 = vmax.f32 %v284_v53, 0.0  ;;  %v426_v13 = vpop.f32.mrf.mxu1 }
  0xfb   :  { %685 = vmatmul.msk.f32.gmra.mxu2 %vm28_vm0, %v300_v54 }
 0x100   :  { %v285_v56 = vld [vmem:[#allocation2 + $0x58] sm:$0xff] }
 0x101   :  { %v301_v57 = vmax.f32 %v285_v56, 0.0  ;;  %v429_v17 = vpop.f32.mrf.mxu1 }
 0x103   :  { %686 = vmatmul.msk.f32.gmra.mxu2 %vm28_vm0, %v301_v57 }
 0x109   :  { %v432_v22 = vpop.f32.mrf.mxu1 }
 0x10b   :  { %687 = vmatmul.msk.f32.gmra.mxu2 %vm28_vm0, %v302_v60 }
 0x11d   :  { %v435_v29 = vpop.f32.mrf.mxu1 }
 0x12e   :  { %v509_v2 = vpop.f32.mrf.mxu2 }
 0x12f   :  { %v510_v4 = vadd.f32 %v509_v2, %v396_v43 }
 0x131   :  { %v559_v5 = vadd.f32 %v945_v1, %v510_v4 }
 0x133   :  { %575 = vst [vmem:[%s1016_s5] sm:$0xff] %v559_v5 }
 0x136   :  { %v512_v7 = vpop.f32.mrf.mxu2 }
 0x137   :  { %v513_v9 = vadd.f32 %v512_v7, %v399_v50 }
 0x139   :  { %v560_v10 = vadd.f32 %v945_v1, %v513_v9 }
 0x13b   :  { %576 = vst [vmem:[%s1016_s5 + $0x8] sm:$0xff] %v560_v10 }
 0x13c   :  { %v548_v19 = vpop.f32.mrf.mxu3 }
 0x13d   :  { %v549_v31 = vadd.f32 %v548_v19, %v435_v29 }
 0x13e   :  { %v515_v12 = vpop.f32.mrf.mxu2 }
 0x13f   :  { %v516_v14 = vadd.f32 %v515_v12, %v402_v55  ;;  %v572_v35 = vadd.f32 %v945_v1, %v549_v31 }
 0x141   :  { %v561_v15 = vadd.f32 %v945_v1, %v516_v14  ;;  %588 = vst [vmem:[%s1016_s5 + $0x68] sm:$0xff] %v572_v35 }
 0x143   :  { %577 = vst [vmem:[%s1016_s5 + $0x10] sm:$0xff] %v561_v15 }
 0x144   :  { %v551_v24 = vpop.f32.mrf.mxu3 }
 0x145   :  { %v552_v25 = vadd.f32 %v551_v24, %v438_v6 }
 0x146   :  { %v518_v16 = vpop.f32.mrf.mxu2 }
 0x147   :  { %v519_v18 = vadd.f32 %v518_v16, %v405_v59  ;;  %v573_v27 = vadd.f32 %v945_v1, %v552_v25 }
 0x149   :  { %v562_v20 = vadd.f32 %v945_v1, %v519_v18  ;;  %589 = vst [vmem:[%s1016_s5 + $0x70] sm:$0xff] %v573_v27 }
 0x14b   :  { %578 = vst [vmem:[%s1016_s5 + $0x18] sm:$0xff] %v562_v20 }
 0x14c   :  { %v554_v32 = vpop.f32.mrf.mxu3 }
 0x14d   :  { %v555_v33 = vadd.f32 %v554_v32, %v441_v11 }
 0x14e   :  { %v521_v21 = vpop.f32.mrf.mxu2 }
 0x14f   :  { %v522_v23 = vadd.f32 %v521_v21, %v408_v61  ;;  %v574_v36 = vadd.f32 %v945_v1, %v555_v33 }
 0x151   :  { %v563_v26 = vadd.f32 %v945_v1, %v522_v23  ;;  %590 = vst [vmem:[%s1016_s5 + $0x78] sm:$0xff] %v574_v36 }
 0x153   :  { %579 = vst [vmem:[%s1016_s5 + $0x20] sm:$0xff] %v563_v26 }
 0x156   :  { %v524_v28 = vpop.f32.mrf.mxu2 }
 0x157   :  { %v525_v30 = vadd.f32 %v524_v28, %v411_v62 }
 0x159   :  { %v564_v34 = vadd.f32 %v945_v1, %v525_v30 }
 0x15b   :  { %580 = vst [vmem:[%s1016_s5 + $0x28] sm:$0xff] %v564_v34 }
 0x15e   :  { %v527_v37 = vpop.f32.mrf.mxu2 }
 0x15f   :  { %v528_v38 = vadd.f32 %v527_v37, %v414_v63 }
 0x161   :  { %v565_v39 = vadd.f32 %v945_v1, %v528_v38 }
 0x163   :  { %581 = vst [vmem:[%s1016_s5 + $0x30] sm:$0xff] %v565_v39 }
 0x166   :  { %v530_v40 = vpop.f32.mrf.mxu2 }
 0x167   :  { %v531_v41 = vadd.f32 %v530_v40, %v417_v0 }
 0x169   :  { %v566_v42 = vadd.f32 %v945_v1, %v531_v41 }
 0x16b   :  { %582 = vst [vmem:[%s1016_s5 + $0x38] sm:$0xff] %v566_v42 }
 0x16e   :  { %v533_v43 = vpop.f32.mrf.mxu2 }
 0x16f   :  { %v534_v44 = vadd.f32 %v533_v43, %v420_v3 }
 0x171   :  { %v567_v45 = vadd.f32 %v945_v1, %v534_v44 }
 0x173   :  { %583 = vst [vmem:[%s1016_s5 + $0x40] sm:$0xff] %v567_v45 }
 0x176   :  { %v536_v46 = vpop.f32.mrf.mxu2 }
 0x177   :  { %v537_v47 = vadd.f32 %v536_v46, %v423_v8 }
 0x179   :  { %v568_v48 = vadd.f32 %v945_v1, %v537_v47 }
 0x17b   :  { %584 = vst [vmem:[%s1016_s5 + $0x48] sm:$0xff] %v568_v48 }
 0x17e   :  { %v539_v49 = vpop.f32.mrf.mxu2 }
 0x17f   :  { %v540_v50 = vadd.f32 %v539_v49, %v426_v13 }
 0x181   :  { %v569_v51 = vadd.f32 %v945_v1, %v540_v50 }
 0x183   :  { %585 = vst [vmem:[%s1016_s5 + $0x50] sm:$0xff] %v569_v51 }
 0x186   :  { %v542_v52 = vpop.f32.mrf.mxu2 }
 0x187   :  { %v543_v53 = vadd.f32 %v542_v52, %v429_v17 }
 0x189   :  { %v570_v54 = vadd.f32 %v945_v1, %v543_v53 }
 0x18b   :  { %586 = vst [vmem:[%s1016_s5 + $0x58] sm:$0xff] %v570_v54 }
 0x18e   :  { %v545_v55 = vpop.f32.mrf.mxu2 }
 0x18f   :  { %v546_v56 = vadd.f32 %v545_v55, %v432_v22 }
 0x191   :  { %v571_v57 = vadd.f32 %v945_v1, %v546_v56 }
 0x193   :  { %587 = vst [vmem:[%s1016_s5 + $0x60] sm:$0xff] %v571_v57 }

</bundles_post_ra>
